<compile_context>
chip_gen: v5e
topology: v5e:2x2
jax: 0.10.0
libtpu: 0.0.40
codegen_flags: <defaults>
</compile_context>

<pallas_src>
import functools
import math

import jax
import jax.numpy as jnp
from jax.experimental import pallas as pl
from jax.experimental.pallas import tpu as pltpu

_LANE = 128


def _round_up(x, m):
    return ((x + m - 1) // m) * m


def _cdiv(a, b):
    return -(-a // b)


def _t5_rmsnorm_kernel(x_ref, w_ref, o_ref, *, inv_hidden, eps, cast_dtype):
    # x_ref: (tm, Hp) tile of hidden_states, w_ref: (1, Hp) effective weight.
    x = x_ref[...].astype(jnp.float32)
    # Sum of squares over the (possibly zero-padded) lane axis, divided by the
    # TRUE hidden size -> exact variance even when Hp > hidden_dim.
    variance = jnp.sum(x * x, axis=-1, keepdims=True) * inv_hidden        # (tm, 1)
    normed = x * jax.lax.rsqrt(variance + eps)                            # f32 (tm, Hp)
    if cast_dtype is not None:
        # PyTorch parity: if LNfit_weight is fp16/bf16, hidden_states is cast to
        # that dtype before the multiply.
        normed = normed.astype(cast_dtype)
    out = w_ref[...] * normed                                             # (1,Hp) * (tm,Hp)
    o_ref[...] = out.astype(o_ref.dtype)                                  # single cast at store


def _sublane_pack(dtype):
    # Rows per packed sublane tile: 8 for 32-bit, 16 for 16-bit, 32 for 8-bit dtypes.
    bits = jnp.dtype(dtype).itemsize * 8
    return max(8, 256 // bits)


def _vmem_budgets():
    """(total tile budget incl. temporaries, vmem_limit_bytes) per chip generation."""
    cap = None
    try:
        info = pltpu.get_tpu_info()
        cap = getattr(info, "vmem_capacity_bytes", None)
    except Exception:
        cap = None
    if cap is None:
        cap = 64 * 1024 * 1024  # conservative: assume the smallest (v7x-sized) VMEM
    if cap <= 64 * 1024 * 1024:
        # v7x: 64 MiB physical per TC.  Keep tiles + f32 temporaries ~40 MiB and
        # the scoped limit at 48 MiB so Mosaic internal scratch has headroom.
        return 40 * 1024 * 1024, 48 * 1024 * 1024
    # v5e / v6e: 128 MiB physical VMEM (default scoped limit is only 16/32 MiB,
    # so the explicit override matters).
    return 80 * 1024 * 1024, 100 * 1024 * 1024


def _choose_row_tile(rows, hidden_padded, in_dtype, out_dtype, vmem_budget):
    """Largest row tile whose double-buffered in+out blocks PLUS the in-kernel
    f32 temporaries fit the generation-aware VMEM budget, shaped so the grid has
    >= 4 (and even) steps when rows permit (v7x two-TensorCore balance)."""
    sublane = max(_sublane_pack(in_dtype), _sublane_pack(out_dtype))
    in_bytes = jnp.dtype(in_dtype).itemsize
    out_bytes = jnp.dtype(out_dtype).itemsize

    # 2x double-buffered input block + 2x double-buffered output block
    # + ~2 tile-sized f32 temporaries (x_f32 and x_f32 * inv) live during compute.
    per_row = hidden_padded * (2 * in_bytes + 2 * out_bytes + 2 * 4)
    tm = max(sublane, vmem_budget // max(per_row, 1))
    tm = min(tm, 1024)                                 # diminishing returns past ~1k rows
    tm = max(sublane, (tm // sublane) * sublane)       # full sublane packing

    rows_rounded = _round_up(rows, sublane)
    tm = min(tm, rows_rounded)

    # Grid shaping: >= 4 steps, even count, when rows are large enough.
    if rows > 4 * sublane:
        grid = _cdiv(rows, tm)
        if grid < 4:
            tm = max(sublane, ((rows // 4) // sublane) * sublane)
            grid = _cdiv(rows, tm)
        if grid % 2 == 1 and grid > 1:
            t = tm
            for _ in range(256):
                t -= sublane
                if t < sublane:
                    break
                if _cdiv(rows, t) % 2 == 0:
                    tm = t
                    break
    return tm, sublane


def t5_layernorm_paralley_forward(hidden_states,
                                  ln_fit_weight,
                                  gumbel_weights=None,
                                  *,
                                  eps=1e-6,
                                  binary_choice=1,
                                  row_tile=None,
                                  output_dtype=None):
    """Pallas implementation of T5LayerNormParalleyLayer.forward.

    hidden_states: (..., hidden_dim)
    ln_fit_weight: (hidden_dim,)
    gumbel_weights: optional (2,); effective weight = gw[0]*0 + gw[1]*ln_fit_weight
    output_dtype: optional override.  For bf16 activations with f32 weights,
                  passing jnp.bfloat16 halves store traffic (this kernel is pure
                  HBM-bandwidth bound); the default keeps PyTorch promotion parity.
    """
    if gumbel_weights is None and binary_choice == 0:
        # Module returns the Python int 0 in this branch.
        return 0

    hidden_dim = hidden_states.shape[-1]
    lead_shape = hidden_states.shape[:-1]
    rows = int(math.prod(lead_shape)) if lead_shape else 1

    # Glue: gumbel-weighted sum over stack([zeros_like(w), w]) == gw[1] * w,
    # computed in the promoted dtype (as PyTorch's stack-sum does).
    if gumbel_weights is not None:
        eff_weight = gumbel_weights[1] * ln_fit_weight
    else:
        eff_weight = ln_fit_weight

    # PyTorch casts hidden_states to the ORIGINAL LNfit_weight dtype when it is half.
    w_dt = jnp.dtype(ln_fit_weight.dtype)
    cast_dtype = w_dt if w_dt in (jnp.dtype(jnp.float16), jnp.dtype(jnp.bfloat16)) else None

    if output_dtype is not None:
        out_dtype = jnp.dtype(output_dtype)
    elif jnp.dtype(eff_weight.dtype) in (jnp.dtype(jnp.float16), jnp.dtype(jnp.bfloat16)):
        out_dtype = jnp.dtype(eff_weight.dtype)
    else:
        out_dtype = jnp.promote_types(hidden_states.dtype, jnp.float32)

    x2d = hidden_states.reshape(rows, hidden_dim)
    w2d = eff_weight.reshape(1, hidden_dim)

    # Lane density: pad the hidden axis to a multiple of 128 so stores are
    # unmasked full-lane vst (weight padded with zeros, output sliced back).
    hidden_padded = _round_up(hidden_dim, _LANE)
    if hidden_padded != hidden_dim:
        pad = hidden_padded - hidden_dim
        x2d = jnp.pad(x2d, ((0, 0), (0, pad)))
        w2d = jnp.pad(w2d, ((0, 0), (0, pad)))

    vmem_budget, vmem_limit = _vmem_budgets()

    if row_tile is None:
        tm, _ = _choose_row_tile(rows, hidden_padded, x2d.dtype, out_dtype, vmem_budget)
    else:
        tm = int(row_tile)

    # No padding copy on the row axis: cdiv grid, Pallas masks the partial last
    # block.  Tail rows compute a per-row norm on whatever the DMA brought in,
    # and their writes are clipped, so valid output rows are exact.
    grid = _cdiv(rows, tm)

    kernel = functools.partial(_t5_rmsnorm_kernel,
                               inv_hidden=1.0 / float(hidden_dim),
                               eps=float(eps),
                               cast_dtype=cast_dtype)

    out = pl.pallas_call(
        kernel,
        out_shape=jax.ShapeDtypeStruct((rows, hidden_padded), out_dtype),
        grid_spec=pltpu.PrefetchScalarGridSpec(
            num_scalar_prefetch=0,
            grid=(grid,),
            in_specs=[
                pl.BlockSpec((tm, hidden_padded), lambda i: (i, 0)),
                # Constant (0,0) block index: weight stays resident, no per-step DMA.
                pl.BlockSpec((1, hidden_padded), lambda i: (0, 0)),
            ],
            out_specs=pl.BlockSpec((tm, hidden_padded), lambda i: (i, 0)),
        ),
        compiler_params=pltpu.CompilerParams(
            dimension_semantics=("parallel",),
            # Generation-aware scoped VMEM limit: the default (16/32 MiB) would
            # silently cap the large tiles on v5e/v6e; on v7x we leave headroom
            # below the 64 MiB physical VMEM for Mosaic internal scratch.
            vmem_limit_bytes=vmem_limit,
        ),
    )(x2d, w2d)

    if hidden_padded != hidden_dim:
        out = out[:, :hidden_dim]
    return out.reshape(*lead_shape, hidden_dim)


def _reference(hidden_states, ln_fit_weight, gumbel_weights=None, eps=1e-6):
    x = hidden_states.astype(jnp.float32)
    var = jnp.mean(x * x, axis=-1, keepdims=True)
    normed = x * jax.lax.rsqrt(var + eps)
    if gumbel_weights is not None:
        w = gumbel_weights[1] * ln_fit_weight
    else:
        w = ln_fit_weight
    return w * normed


if __name__ == "__main__":
    key = jax.random.PRNGKey(0)
    batch, seq, hidden = 2, 8, 32

    k1, k2, k3, k4 = jax.random.split(key, 4)
    hidden_states = jax.random.normal(k1, (batch, seq, hidden), dtype=jnp.float32)

    # Module __init__ with init_method='zero': LNfit_weight = zeros(hidden_dim).
    ln_fit_weight_zero = jnp.zeros((hidden,), dtype=jnp.float32)

    # Non-trivial weight and gumbel weights so the hot path is actually checked.
    ln_fit_weight_rand = jax.random.normal(k2, (hidden,), dtype=jnp.float32)
    gumbel_weights = jax.nn.softmax(jax.random.normal(k3, (2,), dtype=jnp.float32))

    # 1) Faithful module default (zero weight, no gumbel).
    out_zero = t5_layernorm_paralley_forward(hidden_states, ln_fit_weight_zero)
    out_zero = jax.block_until_ready(out_zero)
    ref_zero = _reference(hidden_states, ln_fit_weight_zero)
    assert jnp.allclose(out_zero, ref_zero, atol=1e-5, rtol=1e-5)

    # 2) Non-zero weight, no gumbel.
    out_w = t5_layernorm_paralley_forward(hidden_states, ln_fit_weight_rand)
    out_w = jax.block_until_ready(out_w)
    ref_w = _reference(hidden_states, ln_fit_weight_rand)
    assert jnp.allclose(out_w, ref_w, atol=1e-5, rtol=1e-5)

    # 3) Gumbel-weighted path.
    out_g = t5_layernorm_paralley_forward(hidden_states, ln_fit_weight_rand,
                                          gumbel_weights=gumbel_weights)
    out_g = jax.block_until_ready(out_g)
    ref_g = _reference(hidden_states, ln_fit_weight_rand, gumbel_weights)
    assert jnp.allclose(out_g, ref_g, atol=1e-5, rtol=1e-5)

    # 4) Row count not a multiple of the sublane tile -> exercises the masked
    #    partial last block (no row-padding copy).
    hs_odd = jax.random.normal(k4, (3, 5, hidden), dtype=jnp.float32)
    out_odd = t5_layernorm_paralley_forward(hs_odd, ln_fit_weight_rand)
    out_odd = jax.block_until_ready(out_odd)
    ref_odd = _reference(hs_odd, ln_fit_weight_rand)
    assert jnp.allclose(out_odd, ref_odd, atol=1e-5, rtol=1e-5)

    # 5) bf16 activations with f32 weight, bf16 output override (bandwidth path).
    hs_bf16 = hidden_states.astype(jnp.bfloat16)
    out_bf = t5_layernorm_paralley_forward(hs_bf16, ln_fit_weight_rand,
                                           output_dtype=jnp.bfloat16)
    out_bf = jax.block_until_ready(out_bf)
    ref_bf = _reference(hs_bf16, ln_fit_weight_rand).astype(jnp.bfloat16)
    assert jnp.allclose(out_bf.astype(jnp.float32), ref_bf.astype(jnp.float32),
                        atol=3e-2, rtol=3e-2)

    print("KERNEL_OK")
</pallas_src>

<mosaic_0001>
module attributes {stable_mosaic.version = 11 : i64} {
  func.func @_t5_rmsnorm_kernel(%arg0: i32, %arg1: memref<16x128xf32, #tpu.memory_space<vmem>>, %arg2: memref<1x128xf32, #tpu.memory_space<vmem>>, %arg3: memref<16x128xf32, #tpu.memory_space<vmem>>) attributes {dimension_semantics = [#tpu.dimension_semantics<parallel>], iteration_bounds = array<i64: 1>, scalar_prefetch = 0 : i64, scratch_operands = 0 : i64, tpu.core_type = #tpu.core_type<tc>, window_params = [{transform_indices = @transform_0, window_bounds = array<i64: 16, 128>}, {pipeline_mode = #tpu.pipeline_mode<synchronous>, transform_indices = @transform_1, window_bounds = array<i64: 1, 128>}, {transform_indices = @transform_2, window_bounds = array<i64: 16, 128>}]} {
    %c0 = arith.constant 0 : index
    %c0_0 = arith.constant 0 : index
    %0 = vector.load %arg1[%c0, %c0_0] : memref<16x128xf32, #tpu.memory_space<vmem>>, vector<16x128xf32>
    %1 = arith.mulf %0, %0 : vector<16x128xf32>
    %cst = arith.constant dense<0.000000e+00> : vector<16xf32>
    %2 = vector.multi_reduction <add>, %1, %cst [1] : vector<16x128xf32> to vector<16xf32>
    %3 = vector.shape_cast %2 : vector<16xf32> to vector<16x1xf32>
    %cst_1 = arith.constant 3.125000e-02 : f32
    %4 = vector.broadcast %cst_1 : f32 to vector<16x1xf32>
    %5 = arith.mulf %3, %4 : vector<16x1xf32>
    %cst_2 = arith.constant 9.99999997E-7 : f32
    %6 = vector.broadcast %cst_2 : f32 to vector<16x1xf32>
    %7 = arith.addf %5, %6 : vector<16x1xf32>
    %8 = math.rsqrt %7 : vector<16x1xf32>
    %9 = vector.broadcast %8 : vector<16x1xf32> to vector<16x128xf32>
    %10 = arith.mulf %0, %9 : vector<16x128xf32>
    %c0_3 = arith.constant 0 : index
    %c0_4 = arith.constant 0 : index
    %11 = vector.load %arg2[%c0_3, %c0_4] : memref<1x128xf32, #tpu.memory_space<vmem>>, vector<1x128xf32>
    %12 = vector.broadcast %11 : vector<1x128xf32> to vector<16x128xf32>
    %13 = arith.mulf %12, %10 : vector<16x128xf32>
    %c0_5 = arith.constant 0 : index
    %c0_6 = arith.constant 0 : index
    %14 = vector.load %arg3[%c0_5, %c0_6] : memref<16x128xf32, #tpu.memory_space<vmem>>, vector<16x128xf32>
    tpu.vector_store %arg3[%c0_5, %c0_6], %13 {strides = array<i32>} : memref<16x128xf32, #tpu.memory_space<vmem>>, vector<16x128xf32>,
    return
  }
  func.func @transform_0(%arg0: i32) -> (i32, i32) {
    %c0_i32 = arith.constant 0 : i32
    %c0_i32_0 = arith.constant 0 : i32
    return %arg0, %c0_i32 : i32, i32
  }
  func.func @transform_1(%arg0: i32) -> (i32, i32) {
    %c0_i32 = arith.constant 0 : i32
    %c0_i32_0 = arith.constant 0 : i32
    %c0_i32_1 = arith.constant 0 : i32
    return %c0_i32, %c0_i32_0 : i32, i32
  }
  func.func @transform_2(%arg0: i32) -> (i32, i32) {
    %c0_i32 = arith.constant 0 : i32
    %c0_i32_0 = arith.constant 0 : i32
    return %arg0, %c0_i32 : i32, i32
  }
}

</mosaic_0001>

<bundles_post_ra>
// kernel: tpu_custom_call.1
= control target key start
LH: loop header
LB: loop body
LE: loop exit
PB: predicated region body
PF: predicated region fallthrough
CT: control target
= control target key end

     0   :  { %7 = vsyncpa [#allocation3], 0  ;;  %s227_s0 = inlined_call_operand.hbm [shape: f32[16,128], index: 0, kind: input, shape index: {}]   ;;  %s228_s1 = inlined_call_operand.hbm [shape: f32[1,128], index: 1, kind: input, shape index: {}]   ;;  %s229_s2 = inlined_call_operand.hbm [shape: f32[16,128], index: 2, kind: output, shape index: {}]  }
   0x1   :  { %8 = vsyncpa [#allocation6], 0 }
   0x2   :  { %9 = vsyncpa [#allocation4], 0  ;;  %s14_s11 = sshll.u32 %s227_s0, 4  ;;  %s192_s12 = smov [#allocation2]   ;;  %s15_s11 = int_to_ptr.hbm [resolvable:$true] %s14_s11 }
   0x3   :  { %s16_s13 = sshll.u32 %s192_s12, 4  ;;  %s28_s16 = sshll.u32 %s228_s1, 4  ;;  %s17_s13 = int_to_ptr.vmem [resolvable:$true] %s16_s13  ;;  %s29_s16 = int_to_ptr.hbm [resolvable:$true] %s28_s16 }
   0x4   :  { %s193_s17 = smov 128   ;;  %s194_s18 = smov 8  }
   0x5   :  { %22 = dma.hbm_to_vmem [thread:$0]  %s15_s11, 256, %s17_s13, [#allocation3], %s193_s17, %s193_s17, %s194_s18  }
   0x6   :  { %s195_s19 = smov [#allocation5]  }
   0x7   :  { %s30_s20 = sshll.u32 %s195_s19, 4  ;;  %s31_s20 = int_to_ptr.vmem [resolvable:$true] %s30_s20 }
   0x8   :  { %33 = dma.hbm_to_vmem [thread:$0]  %s29_s16, 16, %s31_s20, [#allocation6]  }
   0x9   :  { %186 = dma.done.wait [#allocation3], 256  }
   0xa   :  { %187 = vsyncadd [#allocation3], 4294967040 }
   0xb   :  { %188 = dma.done.wait [#allocation6], 16  }
   0xc   :  { %189 = vsyncadd [#allocation6], 4294967280  ;;  %v42_v0 = vld [vmem:[#allocation2] sm:$0xff]  ;;  %v43_v2 = vld [vmem:[#allocation2 + $0x8] sm:$0xff]  ;;  %s196_s0 = smov [#allocation7]   ;;  %s90_s23 = sshll.u32 %s229_s2, 4  ;;  %s91_s23 = int_to_ptr.hbm [resolvable:$true] %s90_s23 }
   0xd   :  { %v44_v1 = vmul.f32 %v42_v0, %v42_v0  ;;  %v45_v3 = vmul.f32 %v43_v2, %v43_v2  ;;  %v109_v18 = vld [vmem:[#allocation5] ss:$0 sm:$0xff]  ;;  %s88_s1 = sshll.u32 %s196_s0, 4  ;;  %s89_s1 = int_to_ptr.vmem [resolvable:$true] %s88_s1 }
   0xf   :  { %46 = vadd.xlane.f32.xlu0 %v44_v1 }
  0x17   :  { %48 = vadd.xlane.f32.xlu0 %v45_v3 }
  0x82   :  { %v47_v4 = vpop.xlane.xlu0 %46 }
  0x83   :  { %v50_v5 = vmul.f32 0.03125, %v47_v4 }
  0x85   :  { %v52_v6 = vadd.f32 1e-06, %v50_v5 }
  0x87   :  { %110 = vrsqrt.f32 %v52_v6  ;;  %vm60_vm1 = vweird.f32 %v52_v6 }
  0x8a   :  { %v49_v7 = vpop.xlane.xlu0 %48 }
  0x8b   :  { %v51_v8 = vmul.f32 0.03125, %v49_v7 }
  0x8d   :  { %v111_v9 = vpop.eup %110  ;;  %v53_v10 = vadd.f32 1e-06, %v51_v8 }
  0x8e   :  { %v55_v11 = vmul.f32 %v111_v9, %v52_v6  ;;  %vm61_vm0 = vweird.f32 %v111_v9 }
  0x8f   :  { %112 = vrsqrt.f32 %v53_v10  ;;  %vm62_vm2 = vmor %vm60_vm1, %vm61_vm0  ;;  %vm70_vm4 = vweird.f32 %v53_v10 }
  0x90   :  { %v56_v12 = vmul.f32 %v111_v9, %v55_v11 }
  0x92   :  { %v57_v13 = vmul.f32 0.5, %v56_v12 }
  0x94   :  { %v58_v14 = vsub.f32 1.5, %v57_v13 }
  0x95   :  { %v113_v15 = vpop.eup %112 }
  0x96   :  { %v59_v16 = vmul.f32 %v111_v9, %v58_v14  ;;  %v65_v17 = vmul.f32 %v113_v15, %v53_v10  ;;  %vm71_vm3 = vweird.f32 %v113_v15 }
  0x97   :  { %vm72_vm5 = vmor %vm70_vm4, %vm71_vm3 }
  0x98   :  { %v63_v19 = vsel %vm62_vm2, %v111_v9, %v59_v16  ;;  %v66_v20 = vmul.f32 %v113_v15, %v65_v17 }
  0x99   :  { %v74_v21 = vmul.f32 %v63_v19, %v42_v0 }
  0x9a   :  { %v67_v22 = vmul.f32 0.5, %v66_v20 }
  0x9b   :  { %v80_v23 = vmul.f32 %v109_v18, %v74_v21 }
  0x9c   :  { %v68_v24 = vsub.f32 1.5, %v67_v22 }
  0x9d   :  { %82 = vst [vmem:[#allocation7] sm:$0xff] %v80_v23 }
  0x9e   :  { %v69_v25 = vmul.f32 %v113_v15, %v68_v24 }
  0xa0   :  { %v73_v26 = vsel %vm72_vm5, %v113_v15, %v69_v25 }
  0xa1   :  { %v75_v27 = vmul.f32 %v73_v26, %v43_v2 }
  0xa3   :  { %v81_v28 = vmul.f32 %v109_v18, %v75_v27 }
  0xa5   :  { %83 = vst [vmem:[#allocation7 + $0x8] sm:$0xff] %v81_v28 }
  0xa6   :  { %96 = dma.vmem_to_hbm [thread:$0]  %s89_s1, 256, %s91_s23, [#allocation4], %s193_s17, %s193_s17, %s194_s18  }
  0xa7   :  { %190 = dma.done.wait [#allocation4], 256  }
  0xa8   :  { %191 = vsyncadd [#allocation4], 4294967040 }
  0xa9   :  { %101 = vsyncpa [#allocation3], 1 }
  0xaa   :  { %102 = vsyncpa [#allocation6], 1 }
  0xab   :  { %103 = vsyncpa [#allocation4], 1 }

</bundles_post_ra>
